<compile_context>
chip_gen: v6e
topology: v6e:2x2x1
jax: 0.10.0
libtpu: 0.0.40
codegen_flags: <defaults>
</compile_context>

<pallas_src>
import functools

import jax
import jax.numpy as jnp
from jax.experimental import pallas as pl
from jax.experimental.pallas import tpu as pltpu


_LANE = 128
_TARGET_BLOCK_BYTES = 2 * 1024 * 1024   # ~2 MiB streaming block: >=85% of HBM roofline
_FUSED_SLAB_BUDGET = 40 * 1024 * 1024   # worst-case VMEM footprint allowed for fused path
_FUSED_VMEM_LIMIT = 48 * 1024 * 1024    # safe on v7x (64 MiB physical VMEM)


def _round_up(x, m):
    return ((x + m - 1) // m) * m


def _band_matrix(conv_w, c):
    """(C, C) banded matrix so that  band @ m  == Conv1d(k=3, pad=1, bias=False)."""
    i = jnp.arange(c)[:, None]   # output channel
    j = jnp.arange(c)[None, :]   # input channel
    w = conv_w.astype(jnp.float32)
    band = (w[0] * (j == i - 1).astype(jnp.float32)
            + w[1] * (j == i).astype(jnp.float32)
            + w[2] * (j == i + 1).astype(jnp.float32))
    return band


# --------------------------------------------------------------------------
# Fused single-pass kernel: reduce + gate + rescale on one (C, S) slice.
# --------------------------------------------------------------------------
def _fused_kernel(band_ref, x_ref, o_ref, *, inv_s):
    xv = x_ref[...]                                                   # (C, S)
    m = jnp.sum(xv.astype(jnp.float32), axis=-1, keepdims=True) * inv_s  # (C, 1) f32
    # 3-tap channel conv as a tiny banded matmul -> (C, 1) f32
    y = jnp.dot(band_ref[...], m, preferred_element_type=jnp.float32)
    gate = jax.nn.sigmoid(y)                                          # (C, 1) f32
    o_ref[...] = (xv * gate).astype(o_ref.dtype)


# --------------------------------------------------------------------------
# Phase 1: spatial partial sums (f32 resident accumulator over the inner axis)
# --------------------------------------------------------------------------
def _pool_sum_kernel(x_ref, sum_ref, *, needs_mask, tail):
    @pl.when(pl.program_id(2) == 0)
    def _():
        sum_ref[...] = jnp.zeros_like(sum_ref)

    xv = x_ref[...].astype(jnp.float32)                               # (C, ts)
    if needs_mask:
        # Only the globally-last spatial block is ragged; zero its OOB lanes
        # (Pallas fills them with undefined data, which would corrupt the mean).
        is_tail = ((pl.program_id(1) == pl.num_programs(1) - 1)
                   & (pl.program_id(2) == pl.num_programs(2) - 1))
        lane = jax.lax.broadcasted_iota(jnp.int32, xv.shape, 1)
        xv = jnp.where(is_tail & (lane >= tail), 0.0, xv)

    sum_ref[...] += jnp.sum(xv, axis=-1, keepdims=True)


# --------------------------------------------------------------------------
# Phase 2: streaming per-channel rescale (gate kept in f32, cast on the product)
# --------------------------------------------------------------------------
def _scale_kernel(g_ref, x_ref, o_ref):
    o_ref[...] = (x_ref[...] * g_ref[...]).astype(o_ref.dtype)


def channel_attn(x, conv_w, *, tile_lanes=None, force_two_phase=False):
    """x: (B, C, D, H, W), conv_w: (3,) Conv1d taps -> (B, C, D, H, W)."""
    B, C, D, H, W = x.shape
    S = D * H * W
    itemsize = jnp.dtype(x.dtype).itemsize

    x_flat = x.reshape(B, C, S)            # contiguous -> free reshape, no copy
    band = _band_matrix(conv_w, C)         # (C, C) f32, tiny

    # ---------------- fused single-pass fast path --------------------------
    # Worst-case VMEM footprint: 2x in + 2x out (native dtype) + f32 temporaries.
    fused_bytes = (4 * itemsize + 8) * C * S + 4 * C * C
    if (not force_two_phase) and fused_bytes <= _FUSED_SLAB_BUDGET:
        out_flat = pl.pallas_call(
            functools.partial(_fused_kernel, inv_s=1.0 / float(S)),
            out_shape=jax.ShapeDtypeStruct((B, C, S), x.dtype),
            grid_spec=pltpu.PrefetchScalarGridSpec(
                num_scalar_prefetch=0,
                grid=(B,),
                in_specs=[
                    pl.BlockSpec((C, C), lambda b: (0, 0)),            # band
                    pl.BlockSpec((None, C, S), lambda b: (b, 0, 0)),   # x slice
                ],
                out_specs=pl.BlockSpec((None, C, S), lambda b: (b, 0, 0)),
            ),
            compiler_params=pltpu.CompilerParams(
                dimension_semantics=("parallel",),
                vmem_limit_bytes=_FUSED_VMEM_LIMIT,
            ),
        )(band, x_flat)
        return out_flat.reshape(B, C, D, H, W)

    # ---------------- two-phase tiled path ----------------------------------
    # Lane-dense spatial tile targeting ~2 MiB per block (keeps the pure
    # streaming kernels on the HBM roofline even for small C).
    if tile_lanes is None:
        ts = _TARGET_BLOCK_BYTES // max(1, C * itemsize)
        ts = max(_LANE, (ts // _LANE) * _LANE)
    else:
        assert tile_lanes % _LANE == 0, "tile_lanes must be a multiple of 128"
        ts = tile_lanes
    ts = min(ts, _round_up(S, _LANE))       # never bigger than the (padded) volume

    n_s = (S + ts - 1) // ts                # no host-side padding of x
    tail = S - (n_s - 1) * ts               # valid lanes in the ragged last block
    needs_mask = tail != ts

    # Split the spatial blocks into a small extra "parallel" axis so both v7x
    # TensorCores share the reduction even when B is 1 / odd.
    n_outer = 1
    for d in (4, 3, 2):
        if n_s % d == 0:
            n_outer = d
            break
    n_inner = n_s // n_outer

    block_bytes = C * ts * itemsize
    vmem_limit = max(32 * 1024 * 1024, 6 * block_bytes)

    # ---- phase 1: per-(B, outer, C) partial spatial sums (f32) -------------
    sums = pl.pallas_call(
        functools.partial(_pool_sum_kernel, needs_mask=needs_mask, tail=tail),
        out_shape=jax.ShapeDtypeStruct((B, n_outer, C, 1), jnp.float32),
        grid_spec=pltpu.PrefetchScalarGridSpec(
            num_scalar_prefetch=0,
            grid=(B, n_outer, n_inner),
            in_specs=[pl.BlockSpec(
                (None, C, ts),
                lambda b, o, i: (b, 0, o * n_inner + i))],
            out_specs=pl.BlockSpec(
                (None, None, C, 1),
                lambda b, o, i: (b, o, 0, 0)),
        ),
        compiler_params=pltpu.CompilerParams(
            dimension_semantics=("parallel", "parallel", "arbitrary"),
            vmem_limit_bytes=vmem_limit,
        ),
    )(x_flat)

    # ---- gate: Conv1d(k=3, pad=1, no bias) + sigmoid, full f32 --------------
    m = jnp.sum(sums[..., 0], axis=1) * (1.0 / float(S))    # (B, C) pooled mean
    gate = jax.nn.sigmoid(m @ band.T)[:, :, None]           # (B, C, 1) f32

    # ---- phase 2: streaming per-channel rescale -----------------------------
    out_flat = pl.pallas_call(
        _scale_kernel,
        out_shape=jax.ShapeDtypeStruct((B, C, S), x.dtype),
        grid_spec=pltpu.PrefetchScalarGridSpec(
            num_scalar_prefetch=0,
            grid=(B, n_s),
            in_specs=[
                pl.BlockSpec((None, C, 1), lambda b, s: (b, 0, 0)),   # f32 gate
                pl.BlockSpec((None, C, ts), lambda b, s: (b, 0, s)),  # x tile
            ],
            out_specs=pl.BlockSpec((None, C, ts), lambda b, s: (b, 0, s)),
        ),
        compiler_params=pltpu.CompilerParams(
            dimension_semantics=("parallel", "parallel"),
            vmem_limit_bytes=vmem_limit,
        ),
    )(gate, x_flat)

    return out_flat.reshape(B, C, D, H, W)   # contiguous -> free reshape


def channel_attn_ref(x, conv_w):
    """Pure-JAX reference mirroring the PyTorch forward."""
    B, C = x.shape[:2]
    m = x.reshape(B, C, -1).astype(jnp.float32).mean(-1)    # (B, C)
    m_pad = jnp.pad(m, ((0, 0), (1, 1)))
    y = (conv_w[0] * m_pad[:, :-2]
         + conv_w[1] * m_pad[:, 1:-1]
         + conv_w[2] * m_pad[:, 2:])                         # (B, C)
    scale = jax.nn.sigmoid(y)[:, :, None, None, None]
    return x.astype(jnp.float32) * scale


if __name__ == "__main__":
    key = jax.random.PRNGKey(0)
    kx1, kx2, kx3, kw = jax.random.split(key, 4)

    # Conv1d(1, 1, k=3, bias=False) weight -> 3 taps.
    conv_w = jax.random.normal(kw, (3,), dtype=jnp.float32) * 0.5

    # 1) small volume -> fused single-pass path (auto-selected).
    x1 = jax.random.normal(kx1, (2, 8, 4, 8, 8), dtype=jnp.float32)     # S = 256
    o1 = jax.block_until_ready(channel_attn(x1, conv_w))
    r1 = channel_attn_ref(x1, conv_w)
    assert o1.shape == x1.shape
    assert jnp.allclose(o1, r1, atol=1e-5, rtol=1e-5), "fused path mismatch"

    # 2) forced two-phase path with a ragged spatial extent (tail masking,
    #    3 spatial blocks split onto the extra parallel axis).
    x2 = jax.random.normal(kx2, (2, 8, 4, 9, 8), dtype=jnp.float32)     # S = 288
    o2 = jax.block_until_ready(
        channel_attn(x2, conv_w, tile_lanes=128, force_two_phase=True))
    r2 = channel_attn_ref(x2, conv_w)
    assert o2.shape == x2.shape
    assert jnp.allclose(o2, r2, atol=1e-5, rtol=1e-5), "two-phase path mismatch"

    # 3) bf16 input through the two-phase path (S = 105 < 128: single masked block).
    x3f = jax.random.normal(kx3, (1, 16, 3, 7, 5), dtype=jnp.float32)
    x3 = x3f.astype(jnp.bfloat16)
    o3 = jax.block_until_ready(
        channel_attn(x3, conv_w, tile_lanes=128, force_two_phase=True))
    r3 = channel_attn_ref(x3.astype(jnp.float32), conv_w)
    assert o3.dtype == jnp.bfloat16
    assert jnp.allclose(o3.astype(jnp.float32), r3, atol=2e-2, rtol=2e-2), \
        "bf16 path mismatch"

    print("KERNEL_OK")
</pallas_src>

<mosaic_0001>
module attributes {stable_mosaic.version = 11 : i64} {
  func.func @_fused_kernel(%arg0: i32, %arg1: memref<8x8xf32, #tpu.memory_space<vmem>>, %arg2: memref<1x8x256xf32, #tpu.memory_space<vmem>>, %arg3: memref<1x8x256xf32, #tpu.memory_space<vmem>>) attributes {dimension_semantics = [#tpu.dimension_semantics<parallel>], iteration_bounds = array<i64: 2>, scalar_prefetch = 0 : i64, scratch_operands = 0 : i64, tpu.core_type = #tpu.core_type<tc>, window_params = [{pipeline_mode = #tpu.pipeline_mode<synchronous>, transform_indices = @transform_0, window_bounds = array<i64: 8, 8>}, {transform_indices = @transform_1, window_bounds = array<i64: 1, 8, 256>}, {transform_indices = @transform_2, window_bounds = array<i64: 1, 8, 256>}]} {
    %c0 = arith.constant 0 : index
    %c0_0 = arith.constant 0 : index
    %c0_1 = arith.constant 0 : index
    %0 = vector.load %arg2[%c0, %c0_0, %c0_1] : memref<1x8x256xf32, #tpu.memory_space<vmem>>, vector<1x8x256xf32>
    %1 = vector.shape_cast %0 : vector<1x8x256xf32> to vector<8x256xf32>
    %cst = arith.constant dense<0.000000e+00> : vector<8xf32>
    %2 = vector.multi_reduction <add>, %1, %cst [1] : vector<8x256xf32> to vector<8xf32>
    %3 = vector.shape_cast %2 : vector<8xf32> to vector<8x1xf32>
    %cst_2 = arith.constant 3.906250e-03 : f32
    %4 = vector.broadcast %cst_2 : f32 to vector<8x1xf32>
    %5 = arith.mulf %3, %4 : vector<8x1xf32>
    %c0_3 = arith.constant 0 : index
    %c0_4 = arith.constant 0 : index
    %6 = vector.load %arg1[%c0_3, %c0_4] : memref<8x8xf32, #tpu.memory_space<vmem>>, vector<8x8xf32>
    %cst_5 = arith.constant dense<0.000000e+00> : vector<8x1xf32>
    %7 = tpu.matmul %6, %5, %cst_5 {dimension_numbers = #tpu.dot_dimension_numbers<[1], [0], [0], [1], [0, 0, 1, 1], [], []>} : vector<8x8xf32>, vector<8x1xf32>, vector<8x1xf32> -> vector<8x1xf32>
    %8 = arith.negf %7 : vector<8x1xf32>
    %9 = math.exp %8 : vector<8x1xf32>
    %cst_6 = arith.constant 1.000000e+00 : f32
    %10 = vector.broadcast %cst_6 : f32 to vector<8x1xf32>
    %11 = arith.addf %10, %9 : vector<8x1xf32>
    %12 = arith.divf %10, %11 : vector<8x1xf32>
    %13 = vector.broadcast %12 : vector<8x1xf32> to vector<8x256xf32>
    %14 = arith.mulf %1, %13 : vector<8x256xf32>
    %c0_7 = arith.constant 0 : index
    %c0_8 = arith.constant 0 : index
    %c0_9 = arith.constant 0 : index
    %15 = vector.load %arg3[%c0_7, %c0_8, %c0_9] : memref<1x8x256xf32, #tpu.memory_space<vmem>>, vector<1x8x256xf32>
    %16 = vector.shape_cast %15 : vector<1x8x256xf32> to vector<8x256xf32>
    %17 = vector.shape_cast %14 : vector<8x256xf32> to vector<1x8x256xf32>
    tpu.vector_store %arg3[%c0_7, %c0_8, %c0_9], %17 {strides = array<i32>} : memref<1x8x256xf32, #tpu.memory_space<vmem>>, vector<1x8x256xf32>,
    return
  }
  func.func @transform_0(%arg0: i32) -> (i32, i32) {
    %c0_i32 = arith.constant 0 : i32
    %c0_i32_0 = arith.constant 0 : i32
    %c0_i32_1 = arith.constant 0 : i32
    return %c0_i32, %c0_i32_0 : i32, i32
  }
  func.func @transform_1(%arg0: i32) -> (i32, i32, i32) {
    %c0_i32 = arith.constant 0 : i32
    %c0_i32_0 = arith.constant 0 : i32
    %c0_i32_1 = arith.constant 0 : i32
    return %arg0, %c0_i32, %c0_i32_0 : i32, i32, i32
  }
  func.func @transform_2(%arg0: i32) -> (i32, i32, i32) {
    %c0_i32 = arith.constant 0 : i32
    %c0_i32_0 = arith.constant 0 : i32
    %c0_i32_1 = arith.constant 0 : i32
    return %arg0, %c0_i32, %c0_i32_0 : i32, i32, i32
  }
}

</mosaic_0001>

<bundles_post_ra>
// kernel: tpu_custom_call.1
= control target key start
LH: loop header
LB: loop body
LE: loop exit
PB: predicated region body
PF: predicated region fallthrough
CT: control target
= control target key end

     0   :  { %7 = vsyncpa [#allocation3], 0  ;;  %s779_s0 = inlined_call_operand.hbm [shape: f32[8,8], index: 0, kind: input, shape index: {}]   ;;  %s780_s1 = inlined_call_operand.hbm [shape: f32[2,8,256], index: 1, kind: input, shape index: {}]   ;;  %s781_s2 = inlined_call_operand.hbm [shape: f32[2,8,256], index: 2, kind: output, shape index: {}]  }
   0x1   :  { %8 = vsyncpa [#allocation6], 0 }
   0x2   :  { %10 = vsyncpa [#allocation6 + $0x1], 0 }
   0x3   :  { %11 = vsyncpa [#allocation4], 0 }
   0x4   :  { %13 = vsyncpa [#allocation4 + $0x1], 0  ;;  %s603_s9 = smov 0   ;;  %s605_s10 = smov 0  }
   0x5   :  { %s607_s11 = smov 0   ;;  %s609_s12 = smov 0  }
   0x6 LB: > { %s624_s13 = sadd.s32 4294967295, %s580_s12   ;;  %s366_s14 = sadd.s32 4294967294, %s580_s12   ;;  %s580_s12 = sphi %s609_s12, %s804_s12   ;;  %s576_s11 = sphi %s607_s11, %s803_s11   ;;  %s572_s10 = sphi %s605_s10, %s802_s10   ;;  %s568_s9 = sphi %s603_s9, %s801_s9  }
   0x7   : > { %p60_p0 = scmp.ne.s32.totalorder %s572_s10, %s568_s9  ;;  %p782_p1 = scmp.eq.s32.totalorder %s624_s13, 0 }
   0x8   : > { %p90_p3 = scmp.eq.s32.totalorder %s366_s14, 1  ;;  %p367_p5 = scmp.ge.s32.totalorder %s580_s12, 1 }
   0x9   : > { %p633_p4 = por %p782_p1, %p60_p0  ;;  %p97_p7 = scmp.lt.s32.totalorder %s580_s12, 3 }
   0xa   : > { %p638_p6 = por %p90_p3, %p60_p0  ;;  %s582_s18 = smov [#allocation2]  }
   0xb   : > { %s786_s15 = scalar_select %p633_p4, 1, 0 }
   0xc   : > { %s787_s16 = scalar_select %p638_p6, 1, 0 }
   0xd   : > { %p643_p8 = pnand %p367_p5, %p97_p7  ;;  %s110_s19 = sshll.u32 %s582_s18, 4  ;;  %s111_s19 = int_to_ptr.vmem [resolvable:$true] %s110_s19 }
   0xe   : > { %s651_s20 = sadd.s32 1, %s580_s12   ;;  %s47_s24 = sadd.s32 1, %s576_s11 }
   0xf   : > { %s788_s17 = scalar_select %p643_p8, 1, 0 }
  0x10   : > { %p401_p10 = pneg %p643_p8  ;;  %s44_s22 = ssub.s32 %s580_s12, %s651_s20 }
  0x11   : > { %p661_p12 = scmp.eq.s32.totalorder %s44_s22, 0  ;;  %p54_p13 = scmp.ne.s32.totalorder %s576_s11, %s572_s10 }
  0x12   : > { %p655_p11 = pnand %p401_p10, %p782_p1  ;;  %s469_s25 = scalar_lea.vmem %s111_s19, 128 }
  0x13   : > { %p470_p3 = scmp.ne.s32.totalorder %s111_s19, %s469_s25  ;;  %p477_p9 = scmp.lt.s32.totalorder %s111_s19, %s111_s19 }
  0x14   : > { %p460_p0 = pneg %p655_p11  ;;  %p478_p2 = scmp.lt.s32.totalorder %s469_s25, %s469_s25 }
  0x16   : > { %p472_p5 = pnand %p470_p3, %p460_p0  ;;  %p479_p10 = por %p478_p2, %p477_p9 }
  0x18   : > { %p473_p7 = pneg %p472_p5 }
  0x1a   : > { %p480_p1 = pnand %p479_p10, %p473_p7 }
  0x1c   : > { %483 = shalt.err (!%p480_p1)
}
  0x1d   : > { %404 = dma.hbm_to_vmem [thread:$0]  (!%p655_p11), %s779_s0, 128, %s111_s19, [#allocation3]  }
  0x1e   : > { %s678_s28 = scalar_select %p661_p12, %s576_s11, %s47_s24  }
  0x1f   : > { %p55_p1 = scmp.eq.s32.totalorder %s580_s12, 0  ;;  %p791_p2 = scmp.eq.s32.totalorder %s624_s13, 1 }
  0x20   : > { %p414_p0 = scmp.lt.s32.totalorder %s580_s12, 2  ;;  %s121_s30 = sand.u32 1, %s576_s11  }
  0x21   : > { %p686_p9 = por %p791_p2, %p54_p13  ;;  %p56_p3 = por %p55_p1, %p54_p13 }
  0x22   : > { %s370_s3 = sshll.u32 %s121_s30, 4  ;;  %s384_s4 = sshll.u32 %s580_s12, 8 }
  0x23   : > { %s792_s29 = scalar_select %p686_p9, 1, 0 }
  0x24   : > { %s699_s7 = scalar_lea.hbm %s780_s1, %s384_s4  ;;  %s125_s8 = scalar_lea.vmem [#allocation5], %s370_s3 }
  0x25   : > { %s133_s14 = sshll.u32 %s125_s8, 4  ;;  %p701_p11 = pnand %p414_p0, %p56_p3  ;;  %s134_s14 = int_to_ptr.vmem [resolvable:$true] %s133_s14 }
  0x26   : > { %s122_s19 = scalar_lea.sflag [#allocation6], %s121_s30  ;;  %s484_s21 = scalar_lea.hbm %s699_s7, 256 }
  0x27   : > { %p485_p12 = scmp.ne.s32.totalorder %s699_s7, %s484_s21  ;;  %p486_p13 = pneg %p701_p11 }
  0x28   : > { %s489_s24 = scalar_lea.hbm %s780_s1, 512  ;;  %p490_p10 = scmp.lt.s32.totalorder %s699_s7, %s780_s1 }
  0x29   : > { %p487_p5 = pnand %p486_p13, %p485_p12  ;;  %p491_p1 = scmp.lt.s32.totalorder %s489_s24, %s484_s21 }
  0x2b   : > { %p488_p7 = pneg %p487_p5  ;;  %p492_p2 = por %p491_p1, %p490_p10 }
  0x2d   : > { %p493_p0 = pnand %p492_p2, %p488_p7 }
  0x2f   : > { %496 = shalt.err (!%p493_p0)
}
  0x30   : > { %s497_s27 = scalar_lea.vmem %s134_s14, 256  ;;  %s583_s30 = smov [#allocation5]  }
  0x31   : > { %p498_p3 = scmp.ne.s32.totalorder %s134_s14, %s497_s27  ;;  %s502_s3 = sshll.u32 %s583_s30, 4  ;;  %s503_s3 = int_to_ptr.vmem [resolvable:$false] %s502_s3 }
  0x32   : > { %s504_s4 = scalar_lea.vmem %s503_s3, 512  ;;  %p505_p12 = scmp.lt.s32.totalorder %s134_s14, %s503_s3 }
  0x33   : > { %p500_p6 = pnand %p498_p3, %p486_p13  ;;  %p506_p5 = scmp.lt.s32.totalorder %s504_s4, %s497_s27 }
  0x35   : > { %p501_p9 = pneg %p500_p6  ;;  %p507_p4 = por %p506_p5, %p505_p12 }
  0x37   : > { %p508_p8 = pnand %p507_p4, %p501_p9 }
  0x39   : > { %511 = shalt.err (!%p508_p8)
}
  0x3a   : > { %408 = dma.hbm_to_vmem [thread:$0]  (!%p701_p11), %s699_s7, 256, %s134_s14, %s122_s19  }
  0x3b   : > { %p794_p7 = scmp.ne.s32.totalorder %s788_s17, 0 }
  0x3c   : > { %p795_p10 = scmp.eq.s32.totalorder (!%p794_p7), %s624_s13, 0 }
  0x3d   : > { %142 = sbr.rel (%p794_p7) target bundleno = 579 (0x243), region = 28 }
  0x42   : > { %555 = dma.done.wait (%p795_p10), [#allocation3], 128   ;;  %p796_p6 = pmov %p795_p10 }
  0x43   : > { %s726_s5 = sand.u32 1, %s572_s10   ;;  %p797_p4 = scmp.ne.s32.totalorder %s786_s15, 0 }
  0x44   : > { %557 = vsyncadd (%p796_p6), [#allocation3], 4294967168  ;;  %s375_s6 = sshll.u32 %s726_s5, 4  ;;  %s149_s8 = scalar_lea.sflag [#allocation6], %s726_s5 }
  0x45   : > { %s152_s7 = scalar_lea.vmem [#allocation5], %s375_s6 }
  0x46   : > { %559 = dma.done.wait (%p797_p4), %s149_s8, 256  }
  0x47   : > { %561 = vsyncadd (%p797_p4), %s149_s8, 4294967040  ;;  %v173_v0 = vld [vmem:[%s152_s7] sm:$0xff]  ;;  %v174_v1 = vld [vmem:[%s152_s7 + $0x8] sm:$0xff]  ;;  %v584_v3 = vmov 0.0   ;;  %vm585_vm0 = vmmov 0   ;;  %vm180_vm1 = vcmask 64512  }
  0x48   : > { %v175_v2 = vadd.f32 %v174_v1, %v173_v0  ;;  %388 = vmatprep.subr.mxu0 %v584_v3  ;;  %390 = vmatprep.mubr.msk.f32.mxu0 %vm585_vm0, %v584_v3  ;;  %v179_v6 = vld [vmem:[#allocation2] sm:$0xff]  ;;  %v586_v7 = vmov 0   ;;  %s385_s15 = sshll.u32 %s624_s13, 8  ;;  %s172_s17 = scalar_lea.vmem [#allocation7], %s375_s6 }
  0x49   : > { %453 = vset.pattern.permute.xlu0 %v586_v7  ;;  %s284_s14 = sshll.u32 %s172_s17, 4  ;;  %s742_s21 = scalar_lea.hbm %s781_s2, %s385_s15  ;;  %s285_s14 = int_to_ptr.vmem [resolvable:$true] %s284_s14 }
  0x4a   : > { %176 = vadd.xlane.f32.xlu0 %v175_v2  ;;  %s270_s22 = scalar_lea.sflag [#allocation4], %s726_s5  ;;  %s512_s23 = scalar_lea.vmem %s285_s14, 256 }
  0x4b   : > { %p513_p8 = scmp.ne.s32.totalorder %s285_s14, %s512_s23  ;;  %p798_p9 = scmp.ne.s32.totalorder %s792_s29, 0 }
  0x4c   : > { %s587_s13 = smov [#allocation7]  }
  0x4d   : > { %p514_p11 = pnand %p513_p8, %p798_p9  ;;  %s516_s24 = sshll.u32 %s587_s13, 4  ;;  %s517_s24 = int_to_ptr.vmem [resolvable:$false] %s516_s24 }
  0x4e   : > { %s518_s25 = scalar_lea.vmem %s517_s24, 512  ;;  %p519_p1 = scmp.lt.s32.totalorder %s285_s14, %s517_s24 }
  0x4f   : > { %p515_p13 = pneg %p514_p11  ;;  %p520_p2 = scmp.lt.s32.totalorder %s518_s25, %s512_s23 }
  0x51   : > { %p521_p0 = por %p520_p2, %p519_p1 }
  0x53   : > { %p522_p3 = pnand %p521_p0, %p515_p13 }
  0xd3   : > { %v177_v4 = vpop.xlane.xlu0 %176 }
  0xd4   : > { %v178_v5 = vmul.f32 0.00390625, %v177_v4 }
  0xd6   : > { %389 = vmatpush3.msra.mxu0 %v178_v5 }
  0xd7   : > { %391 = vmatmul.mubr.msk.f32.vlgmr.msra.gmra.mxu0 %vm180_vm1, %v179_v6 }
 0x197   : > { %v250_v8 = vpop.f32.mrf.mxu0 }
 0x198   : > { %v378_v9 = vmul.f32 -1.442695, %v250_v8 }
 0x199   : > { %v392_v10 = vpop.f32.mrf.mxu0 }
 0x19a   : > { %454 = vpow2.f32 %v378_v9 }
 0x1a7   : > { %v455_v11 = vpop.eup %454 }
 0x1a8   : > { %v257_v12 = vadd.f32 1.0, %v455_v11 }
 0x1aa   : > { %456 = vrcp.f32 %v257_v12 }
 0x1b7   : > { %v457_v13 = vpop.eup %456 }
 0x1b8   : > { %262 = vperm.xlu0 %453, %v457_v13  }
 0x233   : > { %v263_v14 = vpop.permute.xlu0 %262 }
 0x234   : > { %v265_v15 = vmul.f32 %v263_v14, %v173_v0  ;;  %v266_v16 = vmul.f32 %v263_v14, %v174_v1 }
 0x236   : > { %267 = vst [vmem:[%s172_s17] sm:$0xff] %v265_v15  ;;  %268 = vst [vmem:[%s172_s17 + $0x8] sm:$0xff] %v266_v16 }
 0x237   : > { %525 = shalt.err (!%p522_p3)
}
 0x238   : > { %s526_s26 = scalar_lea.hbm %s742_s21, 256  ;;  %s530_s3 = scalar_lea.hbm %s781_s2, 512 }
 0x239   : > { %p527_p12 = scmp.ne.s32.totalorder %s742_s21, %s526_s26  ;;  %p531_p10 = scmp.lt.s32.totalorder %s742_s21, %s781_s2 }
 0x23a   : > { %p532_p6 = scmp.lt.s32.totalorder %s530_s3, %s526_s26 }
 0x23b   : > { %p528_p5 = pnand %p527_p12, %p798_p9 }
 0x23c   : > { %p533_p4 = por %p532_p6, %p531_p10 }
 0x23d   : > { %p529_p7 = pneg %p528_p5 }
 0x23f   : > { %p534_p8 = pnand %p533_p4, %p529_p7 }
 0x241   : > { %537 = shalt.err (!%p534_p8)
}
 0x242   : > { %399 = dma.vmem_to_hbm [thread:$0]  (%p798_p9), %s285_s14, 256, %s742_s21, %s270_s22  }
 0x243 PF: > { %s296_s6 = sand.u32 1, %s568_s9   ;;  %p799_p11 = scmp.ne.s32.totalorder %s787_s16, 0 }
 0x244   : > { %p800_p13 = scmp.ge.s32.totalorder %s580_s12, 2  ;;  %s297_s8 = scalar_lea.sflag [#allocation4], %s296_s6 }
 0x246   : > { %p410_p1 = pnand %p800_p13, %p799_p11 }
 0x248   : > { %p411_p2 = pneg %p410_p1 }
 0x24a   : > { %563 = dma.done.wait (%p411_p2), %s297_s8, 256  }
 0x24b   : > { %565 = vsyncadd (%p411_p2), %s297_s8, 4294967040  ;;  %p16_p0 = scmp.ge.s32.totalorder %s651_s20, 4   ;;  %s801_s9 = smov %s572_s10 }
 0x24c   : > { %s802_s10 = smov %s576_s11  ;;  %s803_s11 = smov %s678_s28 }
 0x24d   : > { %s804_s12 = smov %s651_s20  ;;  %18 = sbr.rel (!%p16_p0) target bundleno = 6 (0x6), region = 78 }
 0x252   :  { %302 = vsyncpa [#allocation3], 1 }
 0x253   :  { %304 = vsyncpa [#allocation3 + $0x1], 1 }
 0x254   :  { %305 = vsyncpa [#allocation6], 1 }
 0x255   :  { %307 = vsyncpa [#allocation6 + $0x1], 1 }
 0x256   :  { %308 = vsyncpa [#allocation4], 1 }
 0x257   :  { %310 = vsyncpa [#allocation4 + $0x1], 1 }

</bundles_post_ra>
